<compile_context>
chip_gen: v7x
topology: tpu7x:2x2x1
jax: 0.10.0
libtpu: 0.0.40
codegen_flags: <defaults>
</compile_context>

<pallas_src>
import numpy as np
import jax
import jax.numpy as jnp
from jax.experimental import pallas as pl
from jax.experimental.pallas import tpu as pltpu


def bsm(n, d):
    """Exact port of the reference bsm(): outer `d` concentric rings 0, interior 1."""
    a = [[0] * n for _ in range(n)]
    p = 0
    q = n - 1
    w = int((n + 1) / 2)
    t = 0
    while p < d:
        for i in range(p, q):
            a[p][i] = t
        for i in range(p, q):
            a[i][q] = t
        for i in range(q, p, -1):
            a[q][i] = t
        for i in range(q, p, -1):
            a[i][p] = t
        p += 1
        q -= 1
    while p == d or (p > d and p < q):
        for i in range(p, q):
            a[p][i] = 1
        for i in range(p, q):
            a[i][q] = 1
        for i in range(q, p, -1):
            a[q][i] = 1
        for i in range(q, p, -1):
            a[i][p] = 1
        a[w - 1][w - 1] = 1
        p += 1
        q -= 1
    return np.array(a)


def scale_mask_kernel(x_ref, m_ref, o_ref):
    # x_ref, m_ref, o_ref all have identical block shapes -> plain aligned vmul.
    o_ref[...] = x_ref[...] * m_ref[...]


def _sublane_pack(dtype):
    """Native sublane packing: 8 rows for 32-bit, 16 for 16-bit, 32 for 8-bit dtypes."""
    itemsize = jnp.dtype(dtype).itemsize
    return max(8, 32 // max(1, itemsize))


def _choose_tiles(rows, L, itemsize, pack,
                  target_bytes=4 << 20, lane_split_bytes=512 << 10):
    """Pick (tile_rows, tile_l): ~target-sized blocks, pack/128 aligned, even splits."""
    # ---- lane (last-dim) tiling: only when one pack-row slab would be huge ----
    if L % 128 == 0 and L > 128 and L * itemsize > lane_split_bytes:
        n128 = L // 128
        want128 = max(1, target_bytes // (pack * 128 * itemsize))
        k = min(n128, want128)
        while n128 % k != 0:           # largest divisor of L/128 not above the target
            k -= 1
        tile_l = k * 128
    else:
        tile_l = L                     # full extent: always a legal block dim

    # ---- row (sublane) tiling ----
    if rows <= pack:
        tile_rows = rows               # full extent
    else:
        block_row_bytes = max(1, tile_l * itemsize)
        want = max(pack, (target_bytes // block_row_bytes) // pack * pack)
        # keep >= 2 grid steps along the row axis (v7x megacore sharding)
        half = max(pack, (rows // 2) // pack * pack)
        want = min(want, half)
        # prefer a tile that divides rows evenly (keeps every store unmasked)
        tile_rows = want
        t = want
        while t >= pack:
            if rows % t == 0:
                tile_rows = t
                break
            t -= pack
    return int(tile_rows), int(tile_l)


def scale_mask_forward(x, d, *, min_pallas_bytes=256 * 1024,
                       target_bytes=4 << 20, lane_split_bytes=512 << 10):
    """x: (B, C, H, W) with H == W. Returns x * bsm(W, d) (same dtype as x)."""
    B, C, H, W = x.shape
    assert H == W, "ScaleMaskModule requires square spatial dims (H == W)"

    rows = B * C
    L = H * W
    itemsize = jnp.dtype(x.dtype).itemsize

    mask_flat = np.asarray(bsm(W, d)).reshape(1, L)
    x_flat = x.reshape(rows, L)

    # Tiny problems: fixed custom-call overhead dwarfs the data movement.
    if rows * L * itemsize < min_pallas_bytes:
        mask_j = jnp.asarray(mask_flat, dtype=x.dtype)
        return (x_flat * mask_j).reshape(B, C, H, W)

    pack = _sublane_pack(x.dtype)
    tile_rows, tile_l = _choose_tiles(rows, L, itemsize, pack,
                                      target_bytes=target_bytes,
                                      lane_split_bytes=lane_split_bytes)

    # Replicate the mask to the sublane tile so the multiply is block-aligned.
    mask = jnp.asarray(np.tile(mask_flat, (tile_rows, 1)), dtype=x.dtype)

    lane_tiled = tile_l != L
    if lane_tiled:
        grid = (pl.cdiv(rows, tile_rows), L // tile_l)
        x_spec = pl.BlockSpec((tile_rows, tile_l), lambda i, j: (i, j))
        m_spec = pl.BlockSpec((tile_rows, tile_l), lambda i, j: (0, j))
        o_spec = pl.BlockSpec((tile_rows, tile_l), lambda i, j: (i, j))
        dims = ("parallel", "parallel")
    else:
        grid = (pl.cdiv(rows, tile_rows),)
        x_spec = pl.BlockSpec((tile_rows, tile_l), lambda i: (i, 0))
        m_spec = pl.BlockSpec((tile_rows, tile_l), lambda i: (0, 0))  # VMEM-resident
        o_spec = pl.BlockSpec((tile_rows, tile_l), lambda i: (i, 0))
        dims = ("parallel",)

    cost = pl.CostEstimate(
        flops=x.size,
        transcendentals=0,
        bytes_accessed=2 * x.size * itemsize + mask.size * itemsize,
    )

    out_flat = pl.pallas_call(
        scale_mask_kernel,
        out_shape=jax.ShapeDtypeStruct((rows, L), x.dtype),
        grid=grid,
        in_specs=[x_spec, m_spec],
        out_specs=o_spec,
        compiler_params=pltpu.CompilerParams(
            dimension_semantics=dims,
            vmem_limit_bytes=48 << 20,   # safe on v5e/v6e (128 MiB) and v7x (64 MiB)
        ),
        cost_estimate=cost,
    )(x_flat, mask)

    return out_flat.reshape(B, C, H, W)


if __name__ == "__main__":
    key = jax.random.PRNGKey(0)

    # Shapes implied by the module's forward: (batch, channels, H, W), H == W.
    B, C, H, W = 2, 4, 16, 16
    d = 3  # number of zeroed outer rings

    x = jax.random.normal(key, (B, C, H, W), dtype=jnp.float32)

    # Force the Pallas path (the smoke-test size would otherwise take the
    # small-problem XLA fallback).
    out = scale_mask_forward(x, d, min_pallas_bytes=0)
    out = jax.block_until_ready(out)

    ref = x * jnp.asarray(bsm(W, d), dtype=jnp.float32)[None, None, :, :]
    np.testing.assert_allclose(np.asarray(out), np.asarray(ref), rtol=0, atol=0)

    # Also exercise the 2-D (lane-tiled) grid path on a small shape by shrinking
    # the tiling thresholds; verifies the large-W code path cheaply.
    x2 = jax.random.normal(jax.random.PRNGKey(1), (1, 8, 32, 32), dtype=jnp.float32)
    out2 = scale_mask_forward(x2, 2, min_pallas_bytes=0,
                              target_bytes=4096, lane_split_bytes=1024)
    out2 = jax.block_until_ready(out2)
    ref2 = x2 * jnp.asarray(bsm(32, 2), dtype=jnp.float32)[None, None, :, :]
    np.testing.assert_allclose(np.asarray(out2), np.asarray(ref2), rtol=0, atol=0)

    print("KERNEL_OK")
</pallas_src>

<mosaic_0001>
module attributes {stable_mosaic.version = 11 : i64} {
  func.func @scale_mask_kernel(%arg0: i32, %arg1: memref<8x256xf32, #tpu.memory_space<vmem>>, %arg2: memref<8x256xf32, #tpu.memory_space<vmem>>, %arg3: memref<8x256xf32, #tpu.memory_space<vmem>>) attributes {dimension_semantics = [#tpu.dimension_semantics<parallel>], iteration_bounds = array<i64: 1>, scalar_prefetch = 0 : i64, scratch_operands = 0 : i64, tpu.core_type = #tpu.core_type<tc>, window_params = [{transform_indices = @transform_0, window_bounds = array<i64: 8, 256>}, {pipeline_mode = #tpu.pipeline_mode<synchronous>, transform_indices = @transform_1, window_bounds = array<i64: 8, 256>}, {transform_indices = @transform_2, window_bounds = array<i64: 8, 256>}]} {
    %c0 = arith.constant 0 : index
    %c0_0 = arith.constant 0 : index
    %0 = vector.load %arg1[%c0, %c0_0] : memref<8x256xf32, #tpu.memory_space<vmem>>, vector<8x256xf32>
    %c0_1 = arith.constant 0 : index
    %c0_2 = arith.constant 0 : index
    %1 = vector.load %arg2[%c0_1, %c0_2] : memref<8x256xf32, #tpu.memory_space<vmem>>, vector<8x256xf32>
    %2 = arith.mulf %0, %1 : vector<8x256xf32>
    %c0_3 = arith.constant 0 : index
    %c0_4 = arith.constant 0 : index
    %3 = vector.load %arg3[%c0_3, %c0_4] : memref<8x256xf32, #tpu.memory_space<vmem>>, vector<8x256xf32>
    tpu.vector_store %arg3[%c0_3, %c0_4], %2 {strides = array<i32>} : memref<8x256xf32, #tpu.memory_space<vmem>>, vector<8x256xf32>,
    return
  }
  func.func @transform_0(%arg0: i32) -> (i32, i32) {
    %c0_i32 = arith.constant 0 : i32
    %c0_i32_0 = arith.constant 0 : i32
    return %arg0, %c0_i32 : i32, i32
  }
  func.func @transform_1(%arg0: i32) -> (i32, i32) {
    %c0_i32 = arith.constant 0 : i32
    %c0_i32_0 = arith.constant 0 : i32
    %c0_i32_1 = arith.constant 0 : i32
    return %c0_i32, %c0_i32_0 : i32, i32
  }
  func.func @transform_2(%arg0: i32) -> (i32, i32) {
    %c0_i32 = arith.constant 0 : i32
    %c0_i32_0 = arith.constant 0 : i32
    return %arg0, %c0_i32 : i32, i32
  }
}

</mosaic_0001>

<bundles_post_ra>
// kernel: tpu_custom_call.1
= control target key start
LH: loop header
LB: loop body
LE: loop exit
PB: predicated region body
PF: predicated region fallthrough
CT: control target
= control target key end

     0   :  { %7 = vsyncpa [#allocation3], 0  ;;  %s189_s0 = inlined_call_operand.hbm [shape: f32[8,256], index: 0, kind: input, shape index: {}]   ;;  %s190_s1 = inlined_call_operand.hbm [shape: f32[8,256], index: 1, kind: input, shape index: {}]   ;;  %s191_s2 = inlined_call_operand.hbm [shape: f32[8,256], index: 2, kind: output, shape index: {}]  }
   0x1   :  { %8 = vsyncpa [#allocation6], 0 }
   0x2   :  { %9 = vsyncpa [#allocation4], 0  ;;  %s135_s9 = smov [#allocation2]   ;;  %s136_s11 = smov [#allocation5]  }
   0x3   :  { %s16_s10 = sshll.u32 %s135_s9, 4  ;;  %s26_s12 = sshll.u32 %s136_s11, 4  ;;  %s17_s10 = int_to_ptr.vmem [resolvable:$true] %s16_s10  ;;  %s27_s12 = int_to_ptr.vmem [resolvable:$true] %s26_s12 }
   0x4   :  { %s63_s15 = scalar_lea.hbm %s189_s0, 256 }
   0x5   :  { %p64_p0 = scmp.ne.s32.totalorder %s189_s0, %s63_s15  ;;  %p67_p1 = scmp.lt.u32.totalorder %s63_s15, %s189_s0 }
   0x7   :  { %p69_p2 = pnand %p67_p1, %p64_p0 }
   0x9   :  { %72 = shalt.err (!%p69_p2)
}
   0xa   :  { %s73_s20 = scalar_lea.vmem %s17_s10, 256  ;;  %p78_p4 = scmp.lt.s32.totalorder %s17_s10, %s17_s10 }
   0xb   :  { %p74_p3 = scmp.ne.s32.totalorder %s17_s10, %s73_s20  ;;  %p79_p5 = scmp.lt.s32.totalorder %s73_s20, %s73_s20 }
   0xd   :  { %p80_p6 = por %p79_p5, %p78_p4 }
   0xf   :  { %p81_p7 = pnand %p80_p6, %p74_p3 }
  0x11   :  { %84 = shalt.err (!%p81_p7)
}
  0x12   :  { %19 = dma.hbm_to_vmem [thread:$0]  %s189_s0, 256, %s17_s10, [#allocation3]  }
  0x13   :  { %s85_s25 = scalar_lea.hbm %s190_s1, 256 }
  0x14   :  { %p86_p8 = scmp.ne.s32.totalorder %s190_s1, %s85_s25  ;;  %p89_p9 = scmp.lt.u32.totalorder %s85_s25, %s190_s1 }
  0x16   :  { %p91_p10 = pnand %p89_p9, %p86_p8 }
  0x18   :  { %94 = shalt.err (!%p91_p10)
}
  0x19   :  { %s95_s30 = scalar_lea.vmem %s27_s12, 256  ;;  %p100_p12 = scmp.lt.s32.totalorder %s27_s12, %s27_s12 }
  0x1a   :  { %p96_p11 = scmp.ne.s32.totalorder %s27_s12, %s95_s30  ;;  %p101_p13 = scmp.lt.s32.totalorder %s95_s30, %s95_s30 }
  0x1c   :  { %p102_p0 = por %p101_p13, %p100_p12 }
  0x1e   :  { %p103_p1 = pnand %p102_p0, %p96_p11 }
  0x20   :  { %106 = shalt.err (!%p103_p1)
}
  0x21   :  { %29 = dma.hbm_to_vmem [thread:$0]  %s190_s1, 256, %s27_s12, [#allocation6]  }
  0x22   :  { %129 = dma.done.wait [#allocation3], 256  }
  0x23   :  { %130 = vsyncadd [#allocation3], 4294967040 }
  0x24   :  { %131 = dma.done.wait [#allocation6], 256  }
  0x25   :  { %132 = vsyncadd [#allocation6], 4294967040  ;;  %s137_s4 = smov [#allocation7]   ;;  %v36_v0 = vld [vmem:[#allocation2] sm:$0xff]  ;;  %v38_v1 = vld [vmem:[#allocation5] sm:$0xff] }
  0x26   :  { %s50_s5 = sshll.u32 %s137_s4, 4  ;;  %v37_v2 = vld [vmem:[#allocation2 + $0x8] sm:$0xff]  ;;  %v40_v3 = vmul.f32 %v38_v1, %v36_v0  ;;  %v39_v4 = vld [vmem:[#allocation5 + $0x8] sm:$0xff]  ;;  %s51_s5 = int_to_ptr.vmem [resolvable:$true] %s50_s5 }
  0x27   :  { %v41_v5 = vmul.f32 %v39_v4, %v37_v2  ;;  %s107_s6 = scalar_lea.vmem %s51_s5, 256  ;;  %p112_p3 = scmp.lt.s32.totalorder %s51_s5, %s51_s5 }
  0x28   :  { %42 = vst [vmem:[#allocation7] sm:$0xff] %v40_v3  ;;  %p108_p2 = scmp.ne.s32.totalorder %s51_s5, %s107_s6  ;;  %p113_p4 = scmp.lt.s32.totalorder %s107_s6, %s107_s6 }
  0x29   :  { %43 = vst [vmem:[#allocation7 + $0x8] sm:$0xff] %v41_v5 }
  0x2a   :  { %p114_p5 = por %p113_p4, %p112_p3 }
  0x2c   :  { %p115_p6 = pnand %p114_p5, %p108_p2 }
  0x2e   :  { %118 = shalt.err (!%p115_p6)
}
  0x2f   :  { %s119_s8 = scalar_lea.hbm %s191_s2, 256 }
  0x30   :  { %p120_p7 = scmp.ne.s32.totalorder %s191_s2, %s119_s8  ;;  %p123_p8 = scmp.lt.u32.totalorder %s119_s8, %s191_s2 }
  0x32   :  { %p125_p9 = pnand %p123_p8, %p120_p7 }
  0x34   :  { %128 = shalt.err (!%p125_p9)
}
  0x35   :  { %53 = dma.vmem_to_hbm [thread:$0]  %s51_s5, 256, %s191_s2, [#allocation4]  }
  0x36   :  { %133 = dma.done.wait [#allocation4], 256  }
  0x37   :  { %134 = vsyncadd [#allocation4], 4294967040 }
  0x38   :  { %57 = vsyncpa [#allocation3], 1 }
  0x39   :  { %58 = vsyncpa [#allocation6], 1 }
  0x3a   :  { %59 = vsyncpa [#allocation4], 1 }

</bundles_post_ra>
